<compile_context>
chip_gen: v7x
topology: tpu7x:2x2x1
jax: 0.10.0
libtpu: 0.0.40
codegen_flags: <defaults>
</compile_context>

<pallas_src>
import jax
import jax.numpy as jnp
from jax.experimental import pallas as pl
from jax.experimental.pallas import tpu as pltpu

EPS = 1e-5


def conv_block_kernel(x_ref, t1_ref, t2_ref, g1_ref, bt1_ref, g2_ref, bt2_ref,
                      pool_ref, expand_ref, out_ref, xpad_ref, hpad_ref):
    # x_ref:      (N, H, W*Cin)        bf16, unpadded NHWC with (W,C) merged
    # t1_ref:     (3, W*Cin,  W*Cout)  bf16 banded weights (kx + W-padding folded in)
    # t2_ref:     (3, W*Cout, W*Cout)  bf16
    # g*/bt*_ref: (1, Cout)            f32  BatchNorm gamma / beta
    # pool_ref:   (W*Cout, Cout)       f32  lane -> channel pooling (0/1)
    # expand_ref: (Cout, W*Cout)       f32  channel -> lane broadcast (0/1)
    # out_ref:    (N*H, W*Cout)        f32  lane-dense output
    # xpad_ref:   (N, H+2, W*Cin)      bf16 VMEM scratch (H-padded stage-1 input)
    # hpad_ref:   (N, H+2, W*Cout)     bf16 VMEM scratch (H-padded stage-1 output)
    N, Hp, _ = xpad_ref.shape
    H = Hp - 2
    Dout = out_ref.shape[-1]                      # W * Cout
    Cout = pool_ref.shape[-1]
    W = Dout // Cout
    rows = N * H
    inv_count = 1.0 / float(rows * W)             # 1 / (N*H*W)

    def pad_h(dst_ref, interior):
        # Zero ONLY the two halo rows, then one lane-dense interior store.
        n, hp, d = dst_ref.shape
        zrow = jnp.zeros((n, 1, d), dst_ref.dtype)
        dst_ref[:, 0:1, :] = zrow
        dst_ref[:, hp - 1:hp, :] = zrow
        dst_ref[:, 1:hp - 1, :] = interior.astype(dst_ref.dtype)

    def conv3(src_ref, t_ref):
        # 3 MXU matmuls (one per ky); kx taps + W zero-padding live inside t_ref.
        d_in = src_ref.shape[-1]
        acc = jnp.zeros((rows, Dout), jnp.float32)
        for ky in range(3):
            lhs = src_ref[:, ky:ky + H, :].reshape(rows, d_in)   # bf16
            acc = acc + jnp.dot(lhs, t_ref[ky],
                                preferred_element_type=jnp.float32)
        return acc

    def bn_relu(acc, g_ref, bt_ref):
        # One-pass training-mode BatchNorm (conv bias cancels under mean subtraction).
        s = jnp.sum(acc, axis=0, keepdims=True)                  # (1, W*Cout)
        ss = jnp.sum(acc * acc, axis=0, keepdims=True)           # (1, W*Cout)
        s_c = jnp.dot(s, pool_ref[...], preferred_element_type=jnp.float32)    # (1, Cout)
        ss_c = jnp.dot(ss, pool_ref[...], preferred_element_type=jnp.float32)  # (1, Cout)
        mean_c = s_c * inv_count
        var_c = ss_c * inv_count - mean_c * mean_c               # biased variance
        scale_c = g_ref[...] * jax.lax.rsqrt(var_c + EPS)
        shift_c = bt_ref[...] - mean_c * scale_c
        scale_l = jnp.dot(scale_c, expand_ref[...], preferred_element_type=jnp.float32)
        shift_l = jnp.dot(shift_c, expand_ref[...], preferred_element_type=jnp.float32)
        return jnp.maximum(acc * scale_l + shift_l, 0.0)         # ReLU, f32

    # ---- Stage 1: Conv(in_ch -> out_ch) + BN + ReLU ----
    pad_h(xpad_ref, x_ref[...])
    h1 = bn_relu(conv3(xpad_ref, t1_ref), g1_ref, bt1_ref)       # (N*H, W*Cout) f32

    # ---- Stage 2: Conv(out_ch -> out_ch) + BN + ReLU ----
    pad_h(hpad_ref, h1.reshape(N, H, Dout))                      # cast to bf16 in store
    h2 = bn_relu(conv3(hpad_ref, t2_ref), g2_ref, bt2_ref)

    out_ref[...] = h2.astype(out_ref.dtype)                      # lane-dense store


def _banded_weights(w, W):
    # w: (3, 3, Cin, Cout) -> per-ky band matrix (3, W*Cin, W*Cout) mapping a full
    # row of W pixels.  Zero padding in the W direction is folded in (out-of-range
    # taps simply have no band entry).
    kh, kw, Cin, Cout = w.shape
    wi = jnp.arange(W)
    wo = jnp.arange(W)
    kx = jnp.arange(kw)
    # mask[kx, wi, wo] = 1 iff wi == wo + kx - 1
    mask = (wi[None, :, None] == wo[None, None, :] + kx[:, None, None] - 1)
    mask = mask.astype(jnp.float32)
    t = jnp.einsum('kio,ykab->yiaob', mask, w.astype(jnp.float32))
    return t.reshape(kh, W * Cin, W * Cout).astype(jnp.bfloat16)


def _channel_pool(W, Cout):
    # lane index = w*Cout + c  ->  channel = lane % Cout
    lane = jnp.arange(W * Cout)
    ch = jnp.arange(Cout)
    pool = (lane[:, None] % Cout == ch[None, :]).astype(jnp.float32)   # (W*Cout, Cout)
    return pool, pool.T                                                # expand = pool.T


def conv_block_forward(x_nchw, params):
    w1, b1, g1, bt1, w2, b2, g2, bt2 = params
    del b1, b2  # conv bias is a no-op under training-mode BatchNorm (mean subtraction)
    N, Cin, H, W = x_nchw.shape
    Cout = w1.shape[-1]

    # NCHW -> NHWC -> (N, H, W*Cin), bf16 for the MXU.
    x = jnp.transpose(x_nchw, (0, 2, 3, 1)).reshape(N, H, W * Cin).astype(jnp.bfloat16)

    t1 = _banded_weights(w1, W)                      # (3, W*Cin,  W*Cout) bf16
    t2 = _banded_weights(w2, W)                      # (3, W*Cout, W*Cout) bf16
    pool, expand = _channel_pool(W, Cout)

    g1 = g1.reshape(1, Cout).astype(jnp.float32)
    bt1 = bt1.reshape(1, Cout).astype(jnp.float32)
    g2 = g2.reshape(1, Cout).astype(jnp.float32)
    bt2 = bt2.reshape(1, Cout).astype(jnp.float32)

    flops = 2 * N * H * W * 9 * (Cin * Cout + Cout * Cout)
    bytes_accessed = int(x.size * 2 + t1.size * 2 + t2.size * 2
                         + (pool.size + expand.size) * 4 + N * H * W * Cout * 4)
    cost = pl.CostEstimate(flops=flops, transcendentals=4 * Cout,
                           bytes_accessed=bytes_accessed)

    vmem = pl.BlockSpec(memory_space=pltpu.MemorySpace.VMEM)
    out2d = pl.pallas_call(
        conv_block_kernel,
        out_shape=jax.ShapeDtypeStruct((N * H, W * Cout), jnp.float32),
        in_specs=[vmem] * 9,
        out_specs=vmem,
        scratch_shapes=[
            pltpu.VMEM((N, H + 2, W * Cin), jnp.bfloat16),   # H-padded stage-1 input
            pltpu.VMEM((N, H + 2, W * Cout), jnp.bfloat16),  # H-padded stage-1 output
        ],
        compiler_params=pltpu.CompilerParams(vmem_limit_bytes=32 * 1024 * 1024),
        cost_estimate=cost,
    )(x, t1, t2, g1, bt1, g2, bt2, pool, expand)

    # (N*H, W*Cout) -> NCHW
    return jnp.transpose(out2d.reshape(N, H, W, Cout), (0, 3, 1, 2))


def init_params(key, in_ch, out_ch):
    k1, k2, k3, k4 = jax.random.split(key, 4)
    # Conv weights stored as (kh, kw, Cin, Cout); BN weight=1, bias=0 (PyTorch defaults).
    w1 = jax.random.normal(k1, (3, 3, in_ch, out_ch), jnp.float32) * 0.1
    b1 = jax.random.normal(k2, (1, out_ch), jnp.float32) * 0.1
    w2 = jax.random.normal(k3, (3, 3, out_ch, out_ch), jnp.float32) * 0.1
    b2 = jax.random.normal(k4, (1, out_ch), jnp.float32) * 0.1
    g1 = jnp.ones((1, out_ch), jnp.float32)
    bt1 = jnp.zeros((1, out_ch), jnp.float32)
    g2 = jnp.ones((1, out_ch), jnp.float32)
    bt2 = jnp.zeros((1, out_ch), jnp.float32)
    return (w1, b1, g1, bt1, w2, b2, g2, bt2)


def reference(x_nchw, params):
    # Pure-JAX f32 reference with identical semantics (training-mode BatchNorm).
    w1, b1, g1, bt1, w2, b2, g2, bt2 = params

    def stage(x, w, b, g, bt):
        w_oihw = jnp.transpose(w, (3, 2, 0, 1))
        y = jax.lax.conv_general_dilated(
            x, w_oihw, window_strides=(1, 1), padding=((1, 1), (1, 1)),
            dimension_numbers=("NCHW", "OIHW", "NCHW"))
        y = y + b.reshape(1, -1, 1, 1)
        mean = jnp.mean(y, axis=(0, 2, 3), keepdims=True)
        var = jnp.mean((y - mean) ** 2, axis=(0, 2, 3), keepdims=True)
        y = (y - mean) / jnp.sqrt(var + EPS) * g.reshape(1, -1, 1, 1) + bt.reshape(1, -1, 1, 1)
        return jnp.maximum(y, 0.0)

    x = stage(x_nchw.astype(jnp.float32), w1, b1, g1, bt1)
    x = stage(x, w2, b2, g2, bt2)
    return x


if __name__ == "__main__":
    key = jax.random.PRNGKey(0)
    k_x, k_p = jax.random.split(key)

    in_ch, out_ch = 4, 8
    x = jax.random.normal(k_x, (2, in_ch, 16, 16), jnp.float32)   # NCHW like PyTorch
    params = init_params(k_p, in_ch, out_ch)

    out = jax.block_until_ready(conv_block_forward(x, params))
    ref = jax.block_until_ready(reference(x, params))

    assert out.shape == (2, out_ch, 16, 16)
    # Kernel uses bf16 MXU inputs (f32 accumulation); compare against the f32
    # reference with a correspondingly relaxed tolerance.
    max_err = float(jnp.max(jnp.abs(out - ref)))
    assert jnp.allclose(out, ref, atol=1e-1, rtol=1e-1), max_err

    print("KERNEL_OK")
</pallas_src>

<mosaic_0001>
module attributes {stable_mosaic.version = 11 : i64} {
  func.func @conv_block_kernel(%arg0: memref<2x16x64xbf16, #tpu.memory_space<vmem>>, %arg1: memref<3x64x128xbf16, #tpu.memory_space<vmem>>, %arg2: memref<3x128x128xbf16, #tpu.memory_space<vmem>>, %arg3: memref<1x8xf32, #tpu.memory_space<vmem>>, %arg4: memref<1x8xf32, #tpu.memory_space<vmem>>, %arg5: memref<1x8xf32, #tpu.memory_space<vmem>>, %arg6: memref<1x8xf32, #tpu.memory_space<vmem>>, %arg7: memref<128x8xf32, #tpu.memory_space<vmem>>, %arg8: memref<8x128xf32, #tpu.memory_space<vmem>>, %arg9: memref<32x128xf32, #tpu.memory_space<vmem>>, %arg10: memref<2x18x64xbf16, #tpu.memory_space<vmem>>, %arg11: memref<2x18x128xbf16, #tpu.memory_space<vmem>>) attributes {dimension_semantics = [], scalar_prefetch = 0 : i64, scratch_operands = 2 : i64, tpu.core_type = #tpu.core_type<tc>} {
    %c0 = arith.constant 0 : index
    %c0_0 = arith.constant 0 : index
    %c0_1 = arith.constant 0 : index
    %0 = vector.load %arg0[%c0, %c0_0, %c0_1] : memref<2x16x64xbf16, #tpu.memory_space<vmem>>, vector<2x16x64xbf16>
    %cst = arith.constant 0.000000e+00 : bf16
    %1 = vector.broadcast %cst : bf16 to vector<2x1x64xbf16>
    %c0_2 = arith.constant 0 : index
    %c0_3 = arith.constant 0 : index
    %c0_4 = arith.constant 0 : index
    %2 = vector.load %arg10[%c0_2, %c0_3, %c0_4] : memref<2x18x64xbf16, #tpu.memory_space<vmem>>, vector<2x1x64xbf16>
    tpu.vector_store %arg10[%c0_2, %c0_3, %c0_4], %1 {strides = array<i32>} : memref<2x18x64xbf16, #tpu.memory_space<vmem>>, vector<2x1x64xbf16>,
    %c0_5 = arith.constant 0 : index
    %c17 = arith.constant 17 : index
    %c0_6 = arith.constant 0 : index
    %3 = vector.load %arg10[%c0_5, %c17, %c0_6] : memref<2x18x64xbf16, #tpu.memory_space<vmem>>, vector<2x1x64xbf16>
    tpu.vector_store %arg10[%c0_5, %c17, %c0_6], %1 {strides = array<i32>} : memref<2x18x64xbf16, #tpu.memory_space<vmem>>, vector<2x1x64xbf16>,
    %c0_7 = arith.constant 0 : index
    %c1 = arith.constant 1 : index
    %c0_8 = arith.constant 0 : index
    %4 = vector.load %arg10[%c0_7, %c1, %c0_8] : memref<2x18x64xbf16, #tpu.memory_space<vmem>>, vector<2x16x64xbf16>
    tpu.vector_store %arg10[%c0_7, %c1, %c0_8], %0 {strides = array<i32>} : memref<2x18x64xbf16, #tpu.memory_space<vmem>>, vector<2x16x64xbf16>,
    %cst_9 = arith.constant 0.000000e+00 : f32
    %5 = vector.broadcast %cst_9 : f32 to vector<32x128xf32>
    %c0_10 = arith.constant 0 : index
    %c0_11 = arith.constant 0 : index
    %c0_12 = arith.constant 0 : index
    %6 = vector.load %arg10[%c0_10, %c0_11, %c0_12] : memref<2x18x64xbf16, #tpu.memory_space<vmem>>, vector<2x16x64xbf16>
    %7 = vector.shape_cast %6 : vector<2x16x64xbf16> to vector<32x64xbf16>
    %c0_13 = arith.constant 0 : index
    %c0_14 = arith.constant 0 : index
    %c0_15 = arith.constant 0 : index
    %8 = vector.load %arg1[%c0_13, %c0_14, %c0_15] : memref<3x64x128xbf16, #tpu.memory_space<vmem>>, vector<1x64x128xbf16>
    %9 = vector.shape_cast %8 : vector<1x64x128xbf16> to vector<64x128xbf16>
    %cst_16 = arith.constant dense<0.000000e+00> : vector<32x128xf32>
    %10 = tpu.matmul %7, %9, %cst_16 {dimension_numbers = #tpu.dot_dimension_numbers<[1], [0], [0], [1], [0, 0, 1, 1], [], []>} : vector<32x64xbf16>, vector<64x128xbf16>, vector<32x128xf32> -> vector<32x128xf32>
    %11 = arith.addf %5, %10 : vector<32x128xf32>
    %c0_17 = arith.constant 0 : index
    %c1_18 = arith.constant 1 : index
    %c0_19 = arith.constant 0 : index
    %12 = vector.load %arg10[%c0_17, %c1_18, %c0_19] : memref<2x18x64xbf16, #tpu.memory_space<vmem>>, vector<2x16x64xbf16>
    %13 = vector.shape_cast %12 : vector<2x16x64xbf16> to vector<32x64xbf16>
    %c1_20 = arith.constant 1 : index
    %c0_21 = arith.constant 0 : index
    %c0_22 = arith.constant 0 : index
    %14 = vector.load %arg1[%c1_20, %c0_21, %c0_22] : memref<3x64x128xbf16, #tpu.memory_space<vmem>>, vector<1x64x128xbf16>
    %15 = vector.shape_cast %14 : vector<1x64x128xbf16> to vector<64x128xbf16>
    %cst_23 = arith.constant dense<0.000000e+00> : vector<32x128xf32>
    %16 = tpu.matmul %13, %15, %cst_23 {dimension_numbers = #tpu.dot_dimension_numbers<[1], [0], [0], [1], [0, 0, 1, 1], [], []>} : vector<32x64xbf16>, vector<64x128xbf16>, vector<32x128xf32> -> vector<32x128xf32>
    %17 = arith.addf %11, %16 : vector<32x128xf32>
    %c0_24 = arith.constant 0 : index
    %c2 = arith.constant 2 : index
    %c0_25 = arith.constant 0 : index
    %18 = vector.load %arg10[%c0_24, %c2, %c0_25] : memref<2x18x64xbf16, #tpu.memory_space<vmem>>, vector<2x16x64xbf16>
    %19 = vector.shape_cast %18 : vector<2x16x64xbf16> to vector<32x64xbf16>
    %c2_26 = arith.constant 2 : index
    %c0_27 = arith.constant 0 : index
    %c0_28 = arith.constant 0 : index
    %20 = vector.load %arg1[%c2_26, %c0_27, %c0_28] : memref<3x64x128xbf16, #tpu.memory_space<vmem>>, vector<1x64x128xbf16>
    %21 = vector.shape_cast %20 : vector<1x64x128xbf16> to vector<64x128xbf16>
    %cst_29 = arith.constant dense<0.000000e+00> : vector<32x128xf32>
    %22 = tpu.matmul %19, %21, %cst_29 {dimension_numbers = #tpu.dot_dimension_numbers<[1], [0], [0], [1], [0, 0, 1, 1], [], []>} : vector<32x64xbf16>, vector<64x128xbf16>, vector<32x128xf32> -> vector<32x128xf32>
    %23 = arith.addf %17, %22 : vector<32x128xf32>
    %cst_30 = arith.constant dense<0.000000e+00> : vector<128xf32>
    %24 = vector.multi_reduction <add>, %23, %cst_30 [0] : vector<32x128xf32> to vector<128xf32>
    %25 = vector.shape_cast %24 : vector<128xf32> to vector<1x128xf32>
    %26 = arith.mulf %23, %23 : vector<32x128xf32>
    %cst_31 = arith.constant dense<0.000000e+00> : vector<128xf32>
    %27 = vector.multi_reduction <add>, %26, %cst_31 [0] : vector<32x128xf32> to vector<128xf32>
    %28 = vector.shape_cast %27 : vector<128xf32> to vector<1x128xf32>
    %c0_32 = arith.constant 0 : index
    %c0_33 = arith.constant 0 : index
    %29 = vector.load %arg7[%c0_32, %c0_33] : memref<128x8xf32, #tpu.memory_space<vmem>>, vector<128x8xf32>
    %cst_34 = arith.constant dense<0.000000e+00> : vector<1x8xf32>
    %30 = tpu.matmul %25, %29, %cst_34 {dimension_numbers = #tpu.dot_dimension_numbers<[1], [0], [0], [1], [0, 0, 1, 1], [], []>} : vector<1x128xf32>, vector<128x8xf32>, vector<1x8xf32> -> vector<1x8xf32>
    %c0_35 = arith.constant 0 : index
    %c0_36 = arith.constant 0 : index
    %31 = vector.load %arg7[%c0_35, %c0_36] : memref<128x8xf32, #tpu.memory_space<vmem>>, vector<128x8xf32>
    %cst_37 = arith.constant dense<0.000000e+00> : vector<1x8xf32>
    %32 = tpu.matmul %28, %31, %cst_37 {dimension_numbers = #tpu.dot_dimension_numbers<[1], [0], [0], [1], [0, 0, 1, 1], [], []>} : vector<1x128xf32>, vector<128x8xf32>, vector<1x8xf32> -> vector<1x8xf32>
    %cst_38 = arith.constant 0.001953125 : f32
    %33 = vector.broadcast %cst_38 : f32 to vector<1x8xf32>
    %34 = arith.mulf %30, %33 : vector<1x8xf32>
    %cst_39 = arith.constant 0.001953125 : f32
    %35 = vector.broadcast %cst_39 : f32 to vector<1x8xf32>
    %36 = arith.mulf %32, %35 : vector<1x8xf32>
    %37 = arith.mulf %34, %34 : vector<1x8xf32>
    %38 = arith.subf %36, %37 : vector<1x8xf32>
    %c0_40 = arith.constant 0 : index
    %c0_41 = arith.constant 0 : index
    %39 = vector.load %arg3[%c0_40, %c0_41] : memref<1x8xf32, #tpu.memory_space<vmem>>, vector<1x8xf32>
    %cst_42 = arith.constant 9.99999974E-6 : f32
    %40 = vector.broadcast %cst_42 : f32 to vector<1x8xf32>
    %41 = arith.addf %38, %40 : vector<1x8xf32>
    %42 = math.rsqrt %41 : vector<1x8xf32>
    %43 = arith.mulf %39, %42 : vector<1x8xf32>
    %c0_43 = arith.constant 0 : index
    %c0_44 = arith.constant 0 : index
    %44 = vector.load %arg4[%c0_43, %c0_44] : memref<1x8xf32, #tpu.memory_space<vmem>>, vector<1x8xf32>
    %45 = arith.mulf %34, %43 : vector<1x8xf32>
    %46 = arith.subf %44, %45 : vector<1x8xf32>
    %c0_45 = arith.constant 0 : index
    %c0_46 = arith.constant 0 : index
    %47 = vector.load %arg8[%c0_45, %c0_46] : memref<8x128xf32, #tpu.memory_space<vmem>>, vector<8x128xf32>
    %cst_47 = arith.constant dense<0.000000e+00> : vector<1x128xf32>
    %48 = tpu.matmul %43, %47, %cst_47 {dimension_numbers = #tpu.dot_dimension_numbers<[1], [0], [0], [1], [0, 0, 1, 1], [], []>} : vector<1x8xf32>, vector<8x128xf32>, vector<1x128xf32> -> vector<1x128xf32>
    %c0_48 = arith.constant 0 : index
    %c0_49 = arith.constant 0 : index
    %49 = vector.load %arg8[%c0_48, %c0_49] : memref<8x128xf32, #tpu.memory_space<vmem>>, vector<8x128xf32>
    %cst_50 = arith.constant dense<0.000000e+00> : vector<1x128xf32>
    %50 = tpu.matmul %46, %49, %cst_50 {dimension_numbers = #tpu.dot_dimension_numbers<[1], [0], [0], [1], [0, 0, 1, 1], [], []>} : vector<1x8xf32>, vector<8x128xf32>, vector<1x128xf32> -> vector<1x128xf32>
    %51 = vector.broadcast %48 : vector<1x128xf32> to vector<32x128xf32>
    %52 = arith.mulf %23, %51 : vector<32x128xf32>
    %53 = vector.broadcast %50 : vector<1x128xf32> to vector<32x128xf32>
    %54 = arith.addf %52, %53 : vector<32x128xf32>
    %cst_51 = arith.constant 0.000000e+00 : f32
    %55 = vector.broadcast %cst_51 : f32 to vector<32x128xf32>
    %56 = arith.maximumf %54, %55 : vector<32x128xf32>
    %57 = vector.shape_cast %56 : vector<32x128xf32> to vector<2x16x128xf32>
    %cst_52 = arith.constant 0.000000e+00 : bf16
    %58 = vector.broadcast %cst_52 : bf16 to vector<2x1x128xbf16>
    %c0_53 = arith.constant 0 : index
    %c0_54 = arith.constant 0 : index
    %c0_55 = arith.constant 0 : index
    %59 = vector.load %arg11[%c0_53, %c0_54, %c0_55] : memref<2x18x128xbf16, #tpu.memory_space<vmem>>, vector<2x1x128xbf16>
    tpu.vector_store %arg11[%c0_53, %c0_54, %c0_55], %58 {strides = array<i32>} : memref<2x18x128xbf16, #tpu.memory_space<vmem>>, vector<2x1x128xbf16>,
    %c0_56 = arith.constant 0 : index
    %c17_57 = arith.constant 17 : index
    %c0_58 = arith.constant 0 : index
    %60 = vector.load %arg11[%c0_56, %c17_57, %c0_58] : memref<2x18x128xbf16, #tpu.memory_space<vmem>>, vector<2x1x128xbf16>
    tpu.vector_store %arg11[%c0_56, %c17_57, %c0_58], %58 {strides = array<i32>} : memref<2x18x128xbf16, #tpu.memory_space<vmem>>, vector<2x1x128xbf16>,
    %61 = arith.truncf %57 : vector<2x16x128xf32> to vector<2x16x128xbf16>
    %c0_59 = arith.constant 0 : index
    %c1_60 = arith.constant 1 : index
    %c0_61 = arith.constant 0 : index
    %62 = vector.load %arg11[%c0_59, %c1_60, %c0_61] : memref<2x18x128xbf16, #tpu.memory_space<vmem>>, vector<2x16x128xbf16>
    tpu.vector_store %arg11[%c0_59, %c1_60, %c0_61], %61 {strides = array<i32>} : memref<2x18x128xbf16, #tpu.memory_space<vmem>>, vector<2x16x128xbf16>,
    %cst_62 = arith.constant 0.000000e+00 : f32
    %63 = vector.broadcast %cst_62 : f32 to vector<32x128xf32>
    %c0_63 = arith.constant 0 : index
    %c0_64 = arith.constant 0 : index
    %c0_65 = arith.constant 0 : index
    %64 = vector.load %arg11[%c0_63, %c0_64, %c0_65] : memref<2x18x128xbf16, #tpu.memory_space<vmem>>, vector<2x16x128xbf16>
    %65 = vector.shape_cast %64 : vector<2x16x128xbf16> to vector<32x128xbf16>
    %c0_66 = arith.constant 0 : index
    %c0_67 = arith.constant 0 : index
    %c0_68 = arith.constant 0 : index
    %66 = vector.load %arg2[%c0_66, %c0_67, %c0_68] : memref<3x128x128xbf16, #tpu.memory_space<vmem>>, vector<1x128x128xbf16>
    %67 = vector.shape_cast %66 : vector<1x128x128xbf16> to vector<128x128xbf16>
    %cst_69 = arith.constant dense<0.000000e+00> : vector<32x128xf32>
    %68 = tpu.matmul %65, %67, %cst_69 {dimension_numbers = #tpu.dot_dimension_numbers<[1], [0], [0], [1], [0, 0, 1, 1], [], []>} : vector<32x128xbf16>, vector<128x128xbf16>, vector<32x128xf32> -> vector<32x128xf32>
    %69 = arith.addf %63, %68 : vector<32x128xf32>
    %c0_70 = arith.constant 0 : index
    %c1_71 = arith.constant 1 : index
    %c0_72 = arith.constant 0 : index
    %70 = vector.load %arg11[%c0_70, %c1_71, %c0_72] : memref<2x18x128xbf16, #tpu.memory_space<vmem>>, vector<2x16x128xbf16>
    %71 = vector.shape_cast %70 : vector<2x16x128xbf16> to vector<32x128xbf16>
    %c1_73 = arith.constant 1 : index
    %c0_74 = arith.constant 0 : index
    %c0_75 = arith.constant 0 : index
    %72 = vector.load %arg2[%c1_73, %c0_74, %c0_75] : memref<3x128x128xbf16, #tpu.memory_space<vmem>>, vector<1x128x128xbf16>
    %73 = vector.shape_cast %72 : vector<1x128x128xbf16> to vector<128x128xbf16>
    %cst_76 = arith.constant dense<0.000000e+00> : vector<32x128xf32>
    %74 = tpu.matmul %71, %73, %cst_76 {dimension_numbers = #tpu.dot_dimension_numbers<[1], [0], [0], [1], [0, 0, 1, 1], [], []>} : vector<32x128xbf16>, vector<128x128xbf16>, vector<32x128xf32> -> vector<32x128xf32>
    %75 = arith.addf %69, %74 : vector<32x128xf32>
    %c0_77 = arith.constant 0 : index
    %c2_78 = arith.constant 2 : index
    %c0_79 = arith.constant 0 : index
    %76 = vector.load %arg11[%c0_77, %c2_78, %c0_79] : memref<2x18x128xbf16, #tpu.memory_space<vmem>>, vector<2x16x128xbf16>
    %77 = vector.shape_cast %76 : vector<2x16x128xbf16> to vector<32x128xbf16>
    %c2_80 = arith.constant 2 : index
    %c0_81 = arith.constant 0 : index
    %c0_82 = arith.constant 0 : index
    %78 = vector.load %arg2[%c2_80, %c0_81, %c0_82] : memref<3x128x128xbf16, #tpu.memory_space<vmem>>, vector<1x128x128xbf16>
    %79 = vector.shape_cast %78 : vector<1x128x128xbf16> to vector<128x128xbf16>
    %cst_83 = arith.constant dense<0.000000e+00> : vector<32x128xf32>
    %80 = tpu.matmul %77, %79, %cst_83 {dimension_numbers = #tpu.dot_dimension_numbers<[1], [0], [0], [1], [0, 0, 1, 1], [], []>} : vector<32x128xbf16>, vector<128x128xbf16>, vector<32x128xf32> -> vector<32x128xf32>
    %81 = arith.addf %75, %80 : vector<32x128xf32>
    %cst_84 = arith.constant dense<0.000000e+00> : vector<128xf32>
    %82 = vector.multi_reduction <add>, %81, %cst_84 [0] : vector<32x128xf32> to vector<128xf32>
    %83 = vector.shape_cast %82 : vector<128xf32> to vector<1x128xf32>
    %84 = arith.mulf %81, %81 : vector<32x128xf32>
    %cst_85 = arith.constant dense<0.000000e+00> : vector<128xf32>
    %85 = vector.multi_reduction <add>, %84, %cst_85 [0] : vector<32x128xf32> to vector<128xf32>
    %86 = vector.shape_cast %85 : vector<128xf32> to vector<1x128xf32>
    %c0_86 = arith.constant 0 : index
    %c0_87 = arith.constant 0 : index
    %87 = vector.load %arg7[%c0_86, %c0_87] : memref<128x8xf32, #tpu.memory_space<vmem>>, vector<128x8xf32>
    %cst_88 = arith.constant dense<0.000000e+00> : vector<1x8xf32>
    %88 = tpu.matmul %83, %87, %cst_88 {dimension_numbers = #tpu.dot_dimension_numbers<[1], [0], [0], [1], [0, 0, 1, 1], [], []>} : vector<1x128xf32>, vector<128x8xf32>, vector<1x8xf32> -> vector<1x8xf32>
    %c0_89 = arith.constant 0 : index
    %c0_90 = arith.constant 0 : index
    %89 = vector.load %arg7[%c0_89, %c0_90] : memref<128x8xf32, #tpu.memory_space<vmem>>, vector<128x8xf32>
    %cst_91 = arith.constant dense<0.000000e+00> : vector<1x8xf32>
    %90 = tpu.matmul %86, %89, %cst_91 {dimension_numbers = #tpu.dot_dimension_numbers<[1], [0], [0], [1], [0, 0, 1, 1], [], []>} : vector<1x128xf32>, vector<128x8xf32>, vector<1x8xf32> -> vector<1x8xf32>
    %cst_92 = arith.constant 0.001953125 : f32
    %91 = vector.broadcast %cst_92 : f32 to vector<1x8xf32>
    %92 = arith.mulf %88, %91 : vector<1x8xf32>
    %cst_93 = arith.constant 0.001953125 : f32
    %93 = vector.broadcast %cst_93 : f32 to vector<1x8xf32>
    %94 = arith.mulf %90, %93 : vector<1x8xf32>
    %95 = arith.mulf %92, %92 : vector<1x8xf32>
    %96 = arith.subf %94, %95 : vector<1x8xf32>
    %c0_94 = arith.constant 0 : index
    %c0_95 = arith.constant 0 : index
    %97 = vector.load %arg5[%c0_94, %c0_95] : memref<1x8xf32, #tpu.memory_space<vmem>>, vector<1x8xf32>
    %cst_96 = arith.constant 9.99999974E-6 : f32
    %98 = vector.broadcast %cst_96 : f32 to vector<1x8xf32>
    %99 = arith.addf %96, %98 : vector<1x8xf32>
    %100 = math.rsqrt %99 : vector<1x8xf32>
    %101 = arith.mulf %97, %100 : vector<1x8xf32>
    %c0_97 = arith.constant 0 : index
    %c0_98 = arith.constant 0 : index
    %102 = vector.load %arg6[%c0_97, %c0_98] : memref<1x8xf32, #tpu.memory_space<vmem>>, vector<1x8xf32>
    %103 = arith.mulf %92, %101 : vector<1x8xf32>
    %104 = arith.subf %102, %103 : vector<1x8xf32>
    %c0_99 = arith.constant 0 : index
    %c0_100 = arith.constant 0 : index
    %105 = vector.load %arg8[%c0_99, %c0_100] : memref<8x128xf32, #tpu.memory_space<vmem>>, vector<8x128xf32>
    %cst_101 = arith.constant dense<0.000000e+00> : vector<1x128xf32>
    %106 = tpu.matmul %101, %105, %cst_101 {dimension_numbers = #tpu.dot_dimension_numbers<[1], [0], [0], [1], [0, 0, 1, 1], [], []>} : vector<1x8xf32>, vector<8x128xf32>, vector<1x128xf32> -> vector<1x128xf32>
    %c0_102 = arith.constant 0 : index
    %c0_103 = arith.constant 0 : index
    %107 = vector.load %arg8[%c0_102, %c0_103] : memref<8x128xf32, #tpu.memory_space<vmem>>, vector<8x128xf32>
    %cst_104 = arith.constant dense<0.000000e+00> : vector<1x128xf32>
    %108 = tpu.matmul %104, %107, %cst_104 {dimension_numbers = #tpu.dot_dimension_numbers<[1], [0], [0], [1], [0, 0, 1, 1], [], []>} : vector<1x8xf32>, vector<8x128xf32>, vector<1x128xf32> -> vector<1x128xf32>
    %109 = vector.broadcast %106 : vector<1x128xf32> to vector<32x128xf32>
    %110 = arith.mulf %81, %109 : vector<32x128xf32>
    %111 = vector.broadcast %108 : vector<1x128xf32> to vector<32x128xf32>
    %112 = arith.addf %110, %111 : vector<32x128xf32>
    %cst_105 = arith.constant 0.000000e+00 : f32
    %113 = vector.broadcast %cst_105 : f32 to vector<32x128xf32>
    %114 = arith.maximumf %112, %113 : vector<32x128xf32>
    %c0_106 = arith.constant 0 : index
    %c0_107 = arith.constant 0 : index
    %115 = vector.load %arg9[%c0_106, %c0_107] : memref<32x128xf32, #tpu.memory_space<vmem>>, vector<32x128xf32>
    tpu.vector_store %arg9[%c0_106, %c0_107], %114 {strides = array<i32>} : memref<32x128xf32, #tpu.memory_space<vmem>>, vector<32x128xf32>,
    return
  }
}

</mosaic_0001>

<bundles_post_ra>
// kernel: tpu_custom_call.1
= control target key start
LH: loop header
LB: loop body
LE: loop exit
PB: predicated region body
PF: predicated region fallthrough
CT: control target
= control target key end

     0   :  { %14 = vsyncpa [#allocation5], 0  ;;  %s2976_s0 = inlined_call_operand.vmem [shape: bf16[2,16,64], index: 0, kind: input, shape index: {}]   ;;  %s2977_s1 = inlined_call_operand.vmem [shape: bf16[3,64,128], index: 1, kind: input, shape index: {}]   ;;  %s2978_s2 = inlined_call_operand.hbm [shape: bf16[3,128,128], index: 2, kind: input, shape index: {}]   ;;  %s2979_s3 = inlined_call_operand.vmem [shape: f32[1,8], index: 3, kind: input, shape index: {}]   ;;  %s2980_s4 = inlined_call_operand.vmem [shape: f32[1,8], index: 4, kind: input, shape index: {}]   ;;  %s2981_s5 = inlined_call_operand.vmem [shape: f32[1,8], index: 5, kind: input, shape index: {}]   ;;  %s2982_s6 = inlined_call_operand.vmem [shape: f32[1,8], index: 6, kind: input, shape index: {}]   ;;  %s2983_s7 = inlined_call_operand.vmem [shape: f32[128,8], index: 7, kind: input, shape index: {}]   ;;  %s2984_s8 = inlined_call_operand.vmem [shape: f32[8,128], index: 8, kind: input, shape index: {}]   ;;  %s2985_s9 = inlined_call_operand.hbm [shape: f32[32,128], index: 9, kind: output, shape index: {}]  }
   0x1   :  { %15 = vsyncpa [#allocation6], 0  ;;  %s2441_s30 = smov [#allocation4]   ;;  %s2393_s13 = scalar_lea.hbm %s2978_s2, 3072 }
   0x2   :  { %s25_s10 = sshll.u32 %s2441_s30, 4  ;;  %p2394_p0 = scmp.ne.s32.totalorder %s2978_s2, %s2393_s13  ;;  %s26_s10 = int_to_ptr.vmem [resolvable:$true] %s25_s10 }
   0x3   :  { %p2397_p1 = scmp.lt.u32.totalorder %s2393_s13, %s2978_s2 }
   0x5   :  { %p2399_p2 = pnand %p2397_p1, %p2394_p0 }
   0x7   :  { %2402 = shalt.err (!%p2399_p2)
}
   0x8   :  { %s2403_s18 = scalar_lea.vmem %s26_s10, 3072  ;;  %p2408_p4 = scmp.lt.s32.totalorder %s26_s10, %s26_s10 }
   0x9   :  { %p2404_p3 = scmp.ne.s32.totalorder %s26_s10, %s2403_s18  ;;  %p2409_p5 = scmp.lt.s32.totalorder %s2403_s18, %s2403_s18 }
   0xb   :  { %p2410_p6 = por %p2409_p5, %p2408_p4 }
   0xd   :  { %p2411_p7 = pnand %p2410_p6, %p2404_p3 }
   0xf   :  { %2414 = shalt.err (!%p2411_p7)
}
  0x10   :  { %s2442_s19 = smov 64   ;;  %s2443_s20 = smov 4  }
  0x11   :  { %31 = dma.hbm_to_vmem [thread:$0]  %s2978_s2, 3072, %s26_s10, [#allocation5], %s2442_s19, %s2442_s19, %s2443_s20  }
  0x12   :  { %2437 = dma.done.wait [#allocation5], 3072  }
  0x13   :  { %2438 = vsyncadd [#allocation5], 4294964224  ;;  %vm52_vm0 = vcmask 516096   ;;  %vm53_vm1 = vsmask.f32 256  ;;  %v2349_v0 = vld [vmem:[%s2977_s1] sm:$0xff]  }
  0x14   :  { %v2350_v1 = vld [vmem:[%s2977_s1 + $0x8] sm:$0xff]   ;;  %1984 = vmatprep.subr.bf16.mxu0 %v2349_v0  ;;  %vm2520_vm2 = vmand %vm52_vm0, %vm53_vm1  ;;  %vm61_vm3 = vsmask.f32 7938  ;;  %vm69_vm4 = vsmask.f32 4368  ;;  %v2351_v3 = vld [vmem:[%s2977_s1 + $0x10] sm:$0xff]  }
  0x15   :  { %1985 = vmatpush3.bf16.msra.mxu0 %v2349_v0  ;;  %v2353_v4 = vld [vmem:[%s2977_s1 + $0x20] sm:$0xff]   ;;  %vm111_vm5 = vcmask 519168   ;;  %v50_v7 = vld [vmem:[%s2976_s0 + $0x8] sm:$0xf]  ;;  %v2352_v8 = vld [vmem:[%s2977_s1 + $0x18] sm:$0xff]   ;;  %vm232_vm9 = vcmask 523264  }
  0x16   :  { %1986 = vmatprep.subr.bf16.mxu0 %v2350_v1  ;;  %v48_v5 = vld [vmem:[%s2976_s0] sm:$0xf]  ;;  %v49_v6 = vld [vmem:[%s2976_s0 + $0x4] sm:$0xf]  ;;  %1972 = vmatprep.subr.bf16.mxu1 %v2353_v4  ;;  %v51_v9 = vld [vmem:[%s2976_s0 + $0xc] sm:$0xf] }
  0x17   :  { %v55_v10 = vld [vmem:[#allocation2] sm:$0x1]  ;;  %v58_v11 = vld [vmem:[#allocation2 + $0xc] sm:$0x1]  ;;  %1973 = vmatpush3.bf16.msra.mxu1 %v2353_v4  ;;  %v72_v14 = vshrl.u32 %v48_v5, 16  ;;  %v75_v15 = vshll.u32 %v48_v5, 16  ;;  %vm2551_vm6 = vmor %vm53_vm1, %vm69_vm4 }
  0x18   :  { %v56_v12 = vsel %vm2520_vm2, 0, %v55_v10  ;;  %v59_v13 = vsel %vm2520_vm2, 0, %v58_v11  ;;  %v80_v16 = vshrl.u32 %v49_v6, 16  ;;  %v83_v17 = vshll.u32 %v49_v6, 16  ;;  %v2356_v26 = vld [vmem:[%s2977_s1 + $0x28] sm:$0xff]   ;;  %vm2564_vm7 = vmand %vm111_vm5, %vm61_vm3  ;;  %v2572_v34 = vld [vmem:[%s2977_s1 + $0x40] sm:$0xff]  }
  0x19   :  { %1987 = vmatpush3.bf16.msra.mxu0 %v2350_v1  ;;  %57 = vst [vmem:[#allocation2] sm:$0x1] %v56_v12  ;;  %60 = vst [vmem:[#allocation2 + $0xc] sm:$0x1] %v59_v13  ;;  %v89_v18 = vshrl.u32 %v50_v7, 16  ;;  %v92_v19 = vshll.u32 %v50_v7, 16  ;;  %1974 = vmatprep.subr.bf16.mxu1 %v2356_v26 }
  0x1a   :  { %1988 = vmatprep.subr.bf16.mxu0 %v2351_v3  ;;  %v74_v20 = vrot.slane %v72_v14, 7  ;;  %v97_v21 = vshrl.u32 %v51_v9, 16  ;;  %v100_v22 = vshll.u32 %v51_v9, 16  ;;  %v2555_v24 = vrot.slane %v80_v16, 7  ;;  %v2359_v36 = vld [vmem:[%s2977_s1 + $0x30] sm:$0xff]   ;;  %vm2582_vm8 = vmand %vm52_vm0, %vm61_vm3  ;;  %v2361_v42 = vld [vmem:[%s2977_s1 + $0x38] sm:$0xff]  }
  0x1b   :  { %v91_v25 = vrot.slane %v89_v18, 7  ;;  %1975 = vmatpush3.bf16.msra.mxu1 %v2356_v26  ;;  %v63_v45 = vld [vmem:[#allocation2 + $0x8] sm:$0x1]  ;;  %v66_v46 = vld [vmem:[#allocation2 + $0x14] sm:$0x1]  ;;  %v2444_v51 = vmov 0.0|0.0  }
  0x1c   :  { %v78_v27 = vrot.slane %v74_v20, 4  ;;  %v2560_v28 = vrot.slane %v97_v21, 7  ;;  %v77_v30 = vor.u32 %v75_v15, %v74_v20  ;;  %v85_v31 = vor.u32 %v83_v17, %v2555_v24  ;;  %1976 = vmatprep.subr.bf16.mxu1 %v2359_v36  ;;  %v2358_v0 = vld [vmem:[%s2977_s1 + $0x48] sm:$0xff]   ;;  %v2374_v2 = vld [vmem:[#allocation4 + $0x10] sm:$0xff]  }
  0x1d   :  { %1989 = vmatpush3.bf16.msra.mxu0 %v2351_v3  ;;  %v94_v32 = vor.u32 %v92_v19, %v91_v25  ;;  %v95_v33 = vrot.slane %v91_v25, 4  ;;  %v64_v47 = vsel %vm2582_vm8, 0, %v63_v45  ;;  %v67_v48 = vsel %vm2582_vm8, 0, %v66_v46 }
  0x1e   :  { %1990 = vmatprep.subr.bf16.mxu0 %v2352_v8  ;;  %v102_v35 = vor.u32 %v100_v22, %v2560_v28  ;;  %v86_v37 = vsel %vm2551_vm6, %v78_v27, %v85_v31  ;;  %v87_v49 = vrot.slane %v2555_v24, 4  ;;  %65 = vst [vmem:[#allocation2 + $0x8] sm:$0x1] %v64_v47  ;;  %68 = vst [vmem:[#allocation2 + $0x14] sm:$0x1] %v67_v48  ;;  %v104_v52 = vrot.slane %v2560_v28, 4 }
  0x1f   :  { %117 = vst.msk [vmem:[#allocation2 + $0x4] sm:$0xf] %vm111_vm5, %v86_v37  ;;  %1977 = vmatpush3.bf16.msra.mxu1 %v2359_v36  ;;  %vm142_vm10 = vsmask.f32 3328  ;;  %vm143_vm11 = vsmask.f32 7440 }
  0x20   :  { %v103_v39 = vsel %vm2551_vm6, %v95_v33, %v102_v35  ;;  %v113_v40 = vld [vmem:[#allocation2] sm:$0xf]  ;;  %v121_v41 = vld [vmem:[#allocation2 + $0xc] sm:$0xf]  ;;  %1978 = vmatprep.subr.bf16.mxu1 %v2361_v42  ;;  %vm383_vm12 = vcmask 1042432   ;;  %vm384_vm13 = vcmask 1046532   ;;  %vm2632_vm14 = vmor %vm142_vm10, %vm143_vm11 }
  0x21   :  { %1991 = vmatpush3.bf16.msra.mxu0 %v2352_v8  ;;  %v114_v43 = vsel %vm2564_vm7, %v77_v30, %v113_v40  ;;  %v122_v44 = vsel %vm2564_vm7, %v94_v32, %v121_v41  ;;  %124 = vst.msk [vmem:[#allocation2 + $0x10] sm:$0xf] %vm111_vm5, %v103_v39  ;;  %v2360_v22 = vld [vmem:[%s2977_s1 + $0x50] sm:$0xff]   ;;  %v2362_v31 = vld [vmem:[%s2977_s1 + $0x58] sm:$0xff]   ;;  %vm2640_vm15 = vmor %vm383_vm12, %vm384_vm13  ;;  %vm2445_vm0 = vmmov 0   ;;  %vm855_vm4 = vcmask 1040384  }
  0x22   :  { %1996 = vmatprep.subr.bf16.mxu0 %v2572_v34  ;;  %115 = vst [vmem:[#allocation2] sm:$0xf] %v114_v43  ;;  %123 = vst [vmem:[#allocation2 + $0xc] sm:$0xf] %v122_v44  ;;  %v520_v43 = vld [vmem:[%s2983_s7] sm:$0xff]  ;;  %v521_v48 = vld [vmem:[%s2983_s7 + $0x8] sm:$0xff] }
  0x23   :  { %1979 = vmatpush3.bf16.msra.mxu1 %v2361_v42  ;;  %vm2824_vm5 = vmand %vm855_vm4, %vm53_vm1  ;;  %vm922_vm1 = vcmask 1043456   ;;  %v2387_v33 = vld [vmem:[#allocation4 + $0xb0] sm:$0xff]  }
  0x24   :  { %2228 = vmatprep.subr.bf16.mxu1 %v2444_v51  ;;  %vm863_vm7 = vmand %vm855_vm4, %vm61_vm3 }
  0x25   :  { %v118_v1 = vld [vmem:[#allocation2 + $0x8] sm:$0x1]  ;;  %v125_v7 = vld [vmem:[#allocation2 + $0x14] sm:$0x1]  ;;  %vm2845_vm8 = vmand %vm922_vm1, %vm61_vm3 }
  0x26   :  { %v2603_v50 = vld [vmem:[#allocation2 + $0x4] sm:$0xf]  ;;  %v119_v6 = vsel %vm2520_vm2, %v87_v49, %v118_v1  ;;  %v126_v16 = vsel %vm2520_vm2, %v104_v52, %v125_v7  ;;  %v529_v7 = vld [vmem:[%s2983_s7 + $0x48] sm:$0xff]  ;;  %vm688_vm2 = vcmask 64512  }
  0x27   :  { %v159_v53 = vshrl.u32 %v2603_v50, 16  ;;  %v155_v55 = vshll.u32 %v2603_v50, 16  ;;  %v388_v57 = vrot.slane %v2603_v50, 5  ;;  %120 = vst [vmem:[#allocation2 + $0x8] sm:$0x1] %v119_v6  ;;  %v528_v6 = vld [vmem:[%s2983_s7 + $0x40] sm:$0xff] }
  0x28   :  { %v2608_v54 = vld [vmem:[#allocation2 + $0x10] sm:$0xf]  ;;  %127 = vst [vmem:[#allocation2 + $0x14] sm:$0x1] %v126_v16 }
  0x29   :  { %v128_v56 = vld [vmem:[#allocation2] sm:$0xf]  ;;  %v130_v58 = vld [vmem:[#allocation2 + $0xc] sm:$0xf]  ;;  %v183_v59 = vshrl.u32 %v2608_v54, 16  ;;  %v395_v63 = vrot.slane %v2608_v54, 5 }
  0x2a   :  { %v146_v60 = vshrl.u32 %v128_v56, 16  ;;  %v149_v61 = vshll.u32 %v128_v56, 16  ;;  %v1778_v62 = vcombine.low %v128_v56, %v2603_v50  ;;  %v170_v3 = vshrl.u32 %v130_v58, 16  ;;  %v377_v8 = vld [vmem:[#allocation2] sm:$0xe]  ;;  %v534_v16 = vld [vmem:[%s2983_s7 + $0x70] sm:$0xff] }
  0x2b   :  { %v173_v4 = vshll.u32 %v130_v58, 16  ;;  %v1779_v5 = vcombine.low %v130_v58, %v2608_v54  ;;  %v157_v11 = vrot.slane %v155_v55, 5  ;;  %v161_v12 = vrot.slane %v159_v53, 4  ;;  %v378_v13 = vld [vmem:[#allocation2 + $0xc] sm:$0xe]  ;;  %v523_v58 = vld [vmem:[%s2983_s7 + $0x18] sm:$0xff] }
  0x2c   :  { %v148_v9 = vrot.slane %v146_v60, 4  ;;  %v151_v10 = vrot.slane %v149_v61, 5  ;;  %1992 = vmatprep.mubr.msk.bf16.mxu0 %vm232_vm9, %v1778_v62  ;;  %v172_v14 = vrot.slane %v170_v3, 4  ;;  %v179_v17 = vshll.u32 %v2608_v54, 16  ;;  %v526_v3 = vld [vmem:[%s2983_s7 + $0x30] sm:$0xff] }
  0x2d   :  { %v175_v15 = vrot.slane %v173_v4, 5  ;;  %1993 = vmatmul.mubr.msk.bf16.vlgmr.msra.gmra.mrb[0].mxu0 %vm232_vm9, %v1779_v5  ;;  %v162_v19 = vor.u32 %v161_v12, %v157_v11  ;;  %v185_v20 = vrot.slane %v183_v59, 4  ;;  %v390_v21 = vrot.slane %v388_v57, 4  ;;  %v527_v4 = vld [vmem:[%s2983_s7 + $0x38] sm:$0xff]  ;;  %v532_v12 = vld [vmem:[%s2983_s7 + $0x60] sm:$0xff] }
  0x2e   :  { %1997 = vmatpush3.bf16.msra.mxu0 %v2572_v34  ;;  %v152_v18 = vor.u32 %v151_v10, %v148_v9  ;;  %v181_v25 = vrot.slane %v179_v17, 5  ;;  %v1786_v26 = vrot.slane %v377_v8, 9  ;;  %v1787_v27 = vrot.slane %v378_v13, 9  ;;  %v140_v34 = vld [vmem:[#allocation2 + $0x8] sm:$0x1]  ;;  %v530_v9 = vld [vmem:[%s2983_s7 + $0x50] sm:$0xff] }
  0x2f   :  { %1998 = vmatprep.subr.bf16.mxu0 %v2358_v0  ;;  %v176_v24 = vor.u32 %v175_v15, %v172_v14  ;;  %v397_v28 = vrot.slane %v395_v63, 4  ;;  %v163_v30 = vrot.slane %v162_v19, 4  ;;  %v165_v37 = vshll.u32 %v140_v34, 16  ;;  %v141_v41 = vld [vmem:[#allocation2 + $0x14] sm:$0x1]  ;;  %v531_v10 = vld [vmem:[%s2983_s7 + $0x58] sm:$0xff] }
  0x30   :  { %v153_v29 = vrot.slane %v152_v18, 4  ;;  %v186_v32 = vor.u32 %v185_v20, %v181_v25  ;;  %v391_v38 = vrot.slane %v140_v34, 5  ;;  %v389_v39 = vsel %vm2640_vm15, %v1786_v26, %v388_v57  ;;  %v522_v57 = vld [vmem:[%s2983_s7 + $0x10] sm:$0xff]  ;;  %v533_v13 = vld [vmem:[%s2983_s7 + $0x68] sm:$0xff]  ;;  %v535_v17 = vld [vmem:[%s2983_s7 + $0x78] sm:$0xff] }
  0x31   :  { %v177_v35 = vrot.slane %v176_v24, 4  ;;  %v396_v42 = vsel %vm2640_vm15, %v1787_v27, %v395_v63  ;;  %v167_v44 = vrot.slane %v165_v37, 5  ;;  %v189_v45 = vshll.u32 %v141_v41, 16  ;;  %v524_v63 = vld [vmem:[%s2983_s7 + $0x20] sm:$0xff] }
  0x32   :  { %1999 = vmatpush3.bf16.msra.mxu0 %v2358_v0  ;;  %v187_v36 = vrot.slane %v186_v32, 4  ;;  %v158_v40 = vsel %vm2632_vm14, %v153_v29, %v157_v11  ;;  %v398_v46 = vrot.slane %v141_v41, 5  ;;  %v392_v47 = vsel %vm2640_vm15, %v390_v21, %v391_v38  ;;  %v525_v0 = vld [vmem:[%s2983_s7 + $0x28] sm:$0xff] }
  0x33   :  { %2000 = vmatprep.subr.bf16.mxu0 %v2360_v22  ;;  %v1796_v49 = vcombine.low %v389_v39, %v392_v47  ;;  %v168_v50 = vsel %vm2632_vm14, %v163_v30, %v167_v44  ;;  %v182_v52 = vsel %vm2632_vm14, %v177_v35, %v181_v25  ;;  %v191_v53 = vrot.slane %v189_v45, 5 }
  0x34   :  { %v399_v54 = vsel %vm2640_vm15, %v397_v28, %v398_v46  ;;  %v1770_v55 = vcombine.low %v158_v40, %v168_v50  ;;  %v2673_v60 = vpack.c.bf16 %v521_v48, %v520_v43  ;;  %v2679_v62 = vpack.c.bf16 %v523_v58, %v522_v57 }
  0x35   :  { %2004 = vmatprep.mubr.msk.bf16.mxu0 %vm232_vm9, %v1796_v49  ;;  %v1797_v56 = vcombine.low %v396_v42, %v399_v54  ;;  %v192_v59 = vsel %vm2632_vm14, %v187_v36, %v191_v53  ;;  %v2690_v1 = vpack.c.bf16 %v525_v0, %v524_v63  ;;  %v2700_v5 = vpack.c.bf16 %v527_v4, %v526_v3 }
  0x36   :  { %2001 = vmatpush3.bf16.msra.mxu0 %v2360_v22  ;;  %1980 = vmatprep.mubr.msk.bf16.mxu1 %vm232_vm9, %v1770_v55  ;;  %v1771_v61 = vcombine.low %v182_v52, %v192_v59  ;;  %v2710_v8 = vpack.c.bf16 %v529_v7, %v528_v6  ;;  %v2720_v11 = vpack.c.bf16 %v531_v10, %v530_v9  ;;  %v2446_v15 = vmov 0.0   ;;  %v680_v7 = vld [vmem:[%s2979_s3] sm:$0x1] }
  0x37   :  { %2002 = vmatprep.subr.bf16.mxu0 %v2362_v31  ;;  %v2729_v14 = vpack.c.bf16 %v533_v13, %v532_v12  ;;  %v2744_v18 = vpack.c.bf16 %v535_v17, %v534_v16  ;;  %v684_v12 = vld [vmem:[%s2980_s4] sm:$0x1]  ;;  %v2363_v17 = vld [vmem:[#allocation4 + $0x40] sm:$0xff]  }
  0x38   :  { %1981 = vmatmul.mubr.msk.bf16.vlgmr.msra.gmra.mrb[0].mxu1 %vm232_vm9, %v1771_v61 }
  0x39   :  { %2230 = vmatpush3.bf16.msra.mxu1 %v2673_v60  ;;  %2040 = vmatprep.mubr.msk.f32.mxu1 %vm2445_vm0, %v2446_v15 }
  0x3a   :  { %2003 = vmatpush3.bf16.msra.mxu0 %v2362_v31  ;;  %2231 = vmatprep.subr.bf16.mxu1 %v2444_v51 }
  0x3b   :  { %2078 = vmatprep.subr.mxu0 %v2446_v15 }
  0x3d   :  { %2005 = vmatmul.mubr.msk.bf16.vlgmr.msra.gmra.mrb[0].mxu0 %vm232_vm9, %v1797_v56  ;;  %2233 = vmatpush3.bf16.msra.mxu1 %v2679_v62  ;;  %v2808_v56 = vld [vmem:[%s2984_s8] sm:$0xff] }
  0x3e   :  { %2234 = vmatprep.subr.bf16.mxu1 %v2444_v51  ;;  %2080 = vmatprep.mubr.msk.f32.mxu0 %vm2445_vm0, %v2446_v15 }
  0x3f   :  { %2079 = vmatpush3.msra.mxu0 %v2808_v56 }
  0x40   :  { %2083 = vmatprep.subr.mxu0 %v2446_v15 }
  0x41   :  { %2236 = vmatpush3.bf16.msra.mxu1 %v2690_v1 }
  0x42   :  { %2237 = vmatprep.subr.bf16.mxu1 %v2444_v51 }
  0x45   :  { %2239 = vmatpush3.bf16.msra.mxu1 %v2700_v5 }
  0x46   :  { %2240 = vmatprep.subr.bf16.mxu1 %v2444_v51 }
  0x49   :  { %2242 = vmatpush3.bf16.msra.mxu1 %v2710_v8 }
  0x4a   :  { %2243 = vmatprep.subr.bf16.mxu1 %v2444_v51 }
  0x4d   :  { %2245 = vmatpush3.bf16.msra.mxu1 %v2720_v11 }
  0x4e   :  { %2246 = vmatprep.subr.bf16.mxu1 %v2444_v51 }
  0x51   :  { %2248 = vmatpush3.bf16.msra.mxu1 %v2729_v14 }
  0x52   :  { %2249 = vmatprep.subr.bf16.mxu1 %v2444_v51 }
  0x55   :  { %2251 = vmatpush3.bf16.msra.mxu1 %v2744_v18 }
  0x56   :  { %2252 = vmatprep.subr.bf16.mxu1 %v2444_v51 }
 0x10b   :  { %v1982_v19 = vpop.f32.mrb[0].mxu1 }
 0x10c   :  { %v273_v21 = vpop.f32.mrb[1].mxu1 }
 0x10d   :  { %v1983_v25 = vpop.f32.mrb[2].mxu1 }
 0x10e   :  { %v276_v28 = vpop.f32.mrb[3].mxu1 }
 0x110   :  { %v2006_v20 = vpop.f32.mrb[0].mxu0 }
 0x111   :  { %v2749_v22 = vadd.f32 %v2006_v20, %v1982_v19  ;;  %v479_v24 = vpop.f32.mrb[1].mxu0  ;;  %v857_v19 = vld [vmem:[#allocation3] sm:$0x1]  ;;  %v860_v20 = vld [vmem:[#allocation3 + $0xc] sm:$0x1] }
 0x112   :  { %v2751_v26 = vadd.f32 %v479_v24, %v273_v21  ;;  %v2007_v27 = vpop.f32.mrb[2].mxu0  ;;  %v864_v24 = vld [vmem:[#allocation3 + $0x8] sm:$0x1] }
 0x113   :  { %v2753_v29 = vadd.f32 %v2007_v27, %v1983_v25  ;;  %v482_v30 = vpop.f32.mrb[3].mxu0  ;;  %v509_v45 = vmul.f32 %v2749_v22, %v2749_v22  ;;  %v867_v25 = vld [vmem:[#allocation3 + $0x14] sm:$0x1]  ;;  %v858_v27 = vsel %vm2824_vm5, 0, %v857_v19 }
 0x114   :  { %v2755_v31 = vadd.f32 %v482_v30, %v276_v28  ;;  %v507_v41 = vmul.f32 %v2751_v26, %v2751_v26  ;;  %v861_v28 = vsel %vm2824_vm5, 0, %v860_v20  ;;  %v2364_v30 = vld [vmem:[#allocation4 + $0x48] sm:$0xff]   ;;  %859 = vst [vmem:[#allocation3] sm:$0x1] %v858_v27 }
 0x115   :  { %v510_v47 = vmul.f32 %v2753_v29, %v2753_v29  ;;  %862 = vst [vmem:[#allocation3 + $0xc] sm:$0x1] %v861_v28 }
 0x116   :  { %v498_v32 = vadd.f32 %v2755_v31, %v2751_v26  ;;  %v508_v39 = vmul.f32 %v2755_v31, %v2755_v31 }
 0x118   :  { %v499_v34 = vadd.f32 %v2749_v22, %v498_v32  ;;  %v511_v43 = vadd.f32 %v508_v39, %v507_v41  ;;  %v865_v32 = vsel %vm863_vm7, 0, %v864_v24  ;;  %v2369_v39 = vld [vmem:[#allocation4 + $0x70] sm:$0xff]   ;;  %v2833_v41 = vld [vmem:[#allocation4] sm:$0xff]  }
 0x119   :  { %866 = vst [vmem:[#allocation3 + $0x8] sm:$0x1] %v865_v32 }
 0x11a   :  { %v500_v35 = vadd.f32 %v2753_v29, %v499_v34  ;;  %v512_v46 = vadd.f32 %v511_v43, %v509_v45  ;;  %v868_v34 = vsel %vm863_vm7, 0, %v867_v25 }
 0x11b   :  { %869 = vst [vmem:[#allocation3 + $0x14] sm:$0x1] %v868_v34  ;;  %v924_v19 = vld [vmem:[#allocation3] sm:$0xf] }
 0x11c   :  { %v501_v36 = vrot.slane %v500_v35, 4  ;;  %v513_v48 = vadd.f32 %v512_v46, %v510_v47 }
 0x11e   :  { %v502_v37 = vadd.f32 %v501_v36, %v500_v35  ;;  %v514_v49 = vrot.slane %v513_v48, 4  ;;  %v2365_v35 = vld [vmem:[#allocation4 + $0x50] sm:$0xff]   ;;  %v2366_v36 = vld [vmem:[#allocation4 + $0x58] sm:$0xff]  }
 0x120   :  { %v503_v38 = vrot.slane %v502_v37, 2  ;;  %v515_v50 = vadd.f32 %v514_v49, %v513_v48 }
 0x122   :  { %v504_v40 = vadd.f32 %v503_v38, %v502_v37  ;;  %v516_v52 = vrot.slane %v515_v50, 2  ;;  %v2367_v37 = vld [vmem:[#allocation4 + $0x60] sm:$0xff]   ;;  %v2368_v38 = vld [vmem:[#allocation4 + $0x68] sm:$0xff]  }
 0x124   :  { %v505_v42 = vrot.slane %v504_v40, 1  ;;  %v517_v53 = vadd.f32 %v516_v52, %v515_v50 }
 0x126   :  { %v506_v44 = vadd.f32 %v505_v42, %v504_v40  ;;  %v518_v54 = vrot.slane %v517_v53, 1  ;;  %v2370_v40 = vld [vmem:[#allocation4 + $0x78] sm:$0xff]   ;;  %v835_v42 = vlaneseq }
 0x128   :  { %2041 = vmatmul.mubr.f32.vlgmr.msra.gmra.mrb[4].mxu1 %v506_v44  ;;  %v519_v55 = vadd.f32 %v518_v54, %v517_v53  ;;  %v836_v43 = vshrl.u32 %v835_v42, 7 }
 0x129   :  { %2254 = vmatpush3.bf16.msra.mxu1 %v2673_v60  ;;  %2075 = vmatprep.mubr.msk.f32.mxu1 %vm2445_vm0, %v2446_v15 }
 0x12a   :  { %2255 = vmatprep.subr.bf16.mxu1 %v2444_v51  ;;  %v2836_v44 = vsub.s32 0, %v836_v43 }
 0x12d   :  { %2257 = vmatpush3.bf16.msra.mxu1 %v2679_v62 }
 0x12e   :  { %2258 = vmatprep.subr.bf16.mxu1 %v2444_v51 }
 0x131   :  { %2260 = vmatpush3.bf16.msra.mxu1 %v2690_v1 }
 0x132   :  { %2261 = vmatprep.subr.bf16.mxu1 %v2444_v51 }
 0x135   :  { %2263 = vmatpush3.bf16.msra.mxu1 %v2700_v5 }
 0x136   :  { %2264 = vmatprep.subr.bf16.mxu1 %v2444_v51 }
 0x139   :  { %2266 = vmatpush3.bf16.msra.mxu1 %v2710_v8 }
 0x13a   :  { %2267 = vmatprep.subr.bf16.mxu1 %v2444_v51 }
 0x13d   :  { %2269 = vmatpush3.bf16.msra.mxu1 %v2720_v11 }
 0x13e   :  { %2270 = vmatprep.subr.bf16.mxu1 %v2444_v51 }
 0x141   :  { %2272 = vmatpush3.bf16.msra.mxu1 %v2729_v14 }
 0x142   :  { %2273 = vmatprep.subr.bf16.mxu1 %v2444_v51 }
 0x145   :  { %2275 = vmatpush3.bf16.msra.mxu1 %v2744_v18 }
 0x146   :  { %2276 = vmatprep.subr.bf16.mxu1 %v2444_v51 }
 0x148   :  { %2076 = vmatmul.mubr.f32.vlgmr.msra.gmra.mrb[6].mxu1 %v519_v55 }
 0x149   :  { %2278 = vmatpush3.bf16.msra.mxu1 %v2673_v60  ;;  %2180 = vmatprep.mubr.msk.f32.mxu1 %vm2445_vm0, %v2446_v15 }
 0x14a   :  { %2279 = vmatprep.subr.bf16.mxu1 %v2444_v51 }
 0x14d   :  { %2281 = vmatpush3.bf16.msra.mxu1 %v2679_v62 }
 0x14e   :  { %2282 = vmatprep.subr.bf16.mxu1 %v2444_v51 }
 0x151   :  { %2284 = vmatpush3.bf16.msra.mxu1 %v2690_v1 }
 0x152   :  { %2285 = vmatprep.subr.bf16.mxu1 %v2444_v51 }
 0x155   :  { %2287 = vmatpush3.bf16.msra.mxu1 %v2700_v5 }
 0x156   :  { %2288 = vmatprep.subr.bf16.mxu1 %v2444_v51 }
 0x159   :  { %2290 = vmatpush3.bf16.msra.mxu1 %v2710_v8 }
 0x15a   :  { %2291 = vmatprep.subr.bf16.mxu1 %v2444_v51 }
 0x15d   :  { %2293 = vmatpush3.bf16.msra.mxu1 %v2720_v11 }
 0x15e   :  { %2294 = vmatprep.subr.bf16.mxu1 %v2444_v51 }
 0x161   :  { %2296 = vmatpush3.bf16.msra.mxu1 %v2729_v14 }
 0x162   :  { %2297 = vmatprep.subr.bf16.mxu1 %v2444_v51 }
 0x165   :  { %2299 = vmatpush3.bf16.msra.mxu1 %v2744_v18 }
 0x166   :  { %2300 = vmatprep.subr.bf16.mxu1 %v2444_v51 }
 0x1fb   :  { %v602_v57 = vpop.f32.mrb[4].mxu1 }
 0x1fc   :  { %v2042_v58 = vpop.f32.mrb[5].mxu1  ;;  %v676_v59 = vmul.f32 0.001953125, %v602_v57 }
 0x1fe   :  { %v678_v63 = vmul.f32 %v676_v59, %v676_v59 }
 0x21b   :  { %v672_v61 = vpop.f32.mrb[6].mxu1 }
 0x21c   :  { %v677_v0 = vmul.f32 0.001953125, %v672_v61  ;;  %v2077_v3 = vpop.f32.mrb[7].mxu1 }
 0x21e   :  { %v679_v4 = vsub.f32 %v677_v0, %v678_v63 }
 0x220   :  { %v681_v6 = vadd.f32 1e-05, %v679_v4 }
 0x222   :  { %2389 = vrsqrt.f32 %v681_v6 }
 0x22c   :  { %v2390_v9 = vpop.eup %2389 }
 0x22d   :  { %v683_v10 = vmul.f32 %v2390_v9, %v680_v7 }
 0x22f   :  { %2081 = vmatmul.mubr.msk.f32.vlgmr.msra.gmra.mrb[4].mxu0 %vm688_vm2, %v683_v10  ;;  %v685_v13 = vmul.f32 %v683_v10, %v676_v59 }
 0x230   :  { %2084 = vmatpush3.msra.mxu0 %v2808_v56  ;;  %2085 = vmatprep.mubr.msk.f32.mxu0 %vm2445_vm0, %v2446_v15 }
 0x231   :  { %v686_v16 = vsub.f32 %v684_v12, %v685_v13  ;;  %2088 = vmatprep.subr.bf16.mxu0 %v2363_v17 }
 0x233   :  { %2086 = vmatmul.mubr.msk.f32.vlgmr.msra.gmra.mrb[6].mxu0 %vm688_vm2, %v686_v16 }
 0x234   :  { %2089 = vmatpush3.bf16.msra.mxu0 %v2363_v17 }
 0x235   :  { %2090 = vmatprep.subr.bf16.mxu0 %v2364_v30 }
 0x238   :  { %2091 = vmatpush3.bf16.msra.mxu0 %v2364_v30  ;;  %v928_v30 = vld [vmem:[#allocation3 + $0x8] sm:$0x1] }
 0x239   :  { %2092 = vmatprep.subr.bf16.mxu0 %v2365_v35 }
 0x23c   :  { %2093 = vmatpush3.bf16.msra.mxu0 %v2365_v35 }
 0x23d   :  { %2094 = vmatprep.subr.bf16.mxu0 %v2366_v36 }
 0x240   :  { %2095 = vmatpush3.bf16.msra.mxu0 %v2366_v36 }
 0x241   :  { %2096 = vmatprep.subr.bf16.mxu0 %v2367_v37 }
 0x244   :  { %2097 = vmatpush3.bf16.msra.mxu0 %v2367_v37  ;;  %v931_v37 = vld [vmem:[#allocation3 + $0xc] sm:$0xf] }
 0x245   :  { %2098 = vmatprep.subr.bf16.mxu0 %v2368_v38 }
 0x248   :  { %2099 = vmatpush3.bf16.msra.mxu0 %v2368_v38  ;;  %v935_v38 = vld [vmem:[#allocation3 + $0x14] sm:$0x1] }
 0x249   :  { %2100 = vmatprep.subr.bf16.mxu0 %v2369_v39 }
 0x24c   :  { %2101 = vmatpush3.bf16.msra.mxu0 %v2369_v39 }
 0x24d   :  { %2102 = vmatprep.subr.bf16.mxu0 %v2370_v40 }
 0x250   :  { %2103 = vmatpush3.bf16.msra.mxu0 %v2370_v40 }
 0x251   :  { %2108 = vmatprep.subr.bf16.mxu0 %v2833_v41 }
 0x302   :  { %v758_v45 = vpop.f32.mrb[4].mxu0 }
 0x303   :  { %v838_v46 = vrot.slane %v758_v45, %v2836_v44  ;;  %v2082_v47 = vpop.f32.mrb[5].mxu0 }
 0x305   :  { %v839_v48 = vmul.f32 %v2751_v26, %v838_v46  ;;  %v840_v50 = vmul.f32 %v2755_v31, %v838_v46  ;;  %v841_v52 = vmul.f32 %v2749_v22, %v838_v46  ;;  %v842_v53 = vmul.f32 %v2753_v29, %v838_v46 }
 0x306   :  { %v831_v49 = vpop.f32.mrb[6].mxu0 }
 0x307   :  { %v846_v54 = vrot.slane %v831_v49, %v2836_v44  ;;  %v2087_v55 = vpop.f32.mrb[7].mxu0 }
 0x309   :  { %v847_v57 = vadd.f32 %v846_v54, %v839_v48  ;;  %v848_v58 = vadd.f32 %v846_v54, %v840_v50  ;;  %v849_v59 = vadd.f32 %v846_v54, %v841_v52  ;;  %v850_v61 = vadd.f32 %v846_v54, %v842_v53 }
 0x30b   :  { %v851_v63 = vmax.f32 %v847_v57, 0.0  ;;  %v852_v0 = vmax.f32 %v848_v58, 0.0  ;;  %v853_v3 = vmax.f32 %v849_v59, 0.0  ;;  %v854_v4 = vmax.f32 %v850_v61, 0.0 }
 0x30d   :  { %v1844_v6 = vpack.c.bf16 %v851_v63, %v851_v63  ;;  %v1845_v26 = vpack.c.bf16 %v852_v0, %v852_v0  ;;  %v1846_v7 = vpack.c.bf16 %v853_v3, %v853_v3  ;;  %v1847_v9 = vpack.c.bf16 %v854_v4, %v854_v4 }
 0x30f   :  { %v883_v31 = vshrl.u32 %v1844_v6, 16  ;;  %v891_v10 = vshrl.u32 %v1845_v26, 16  ;;  %v900_v22 = vshrl.u32 %v1846_v7, 16  ;;  %v908_v29 = vshrl.u32 %v1847_v9, 16 }
 0x310   :  { %v886_v13 = vshll.u32 %v1844_v6, 16  ;;  %v894_v17 = vshll.u32 %v1845_v26, 16  ;;  %v903_v24 = vshll.u32 %v1846_v7, 16  ;;  %v911_v27 = vshll.u32 %v1847_v9, 16 }
 0x311   :  { %v885_v12 = vrot.slane %v883_v31, 7  ;;  %v893_v16 = vrot.slane %v891_v10, 7  ;;  %v902_v20 = vrot.slane %v900_v22, 7  ;;  %v910_v25 = vrot.slane %v908_v29, 7 }
 0x313   :  { %v888_v32 = vor.u32 %v886_v13, %v885_v12  ;;  %v889_v34 = vrot.slane %v885_v12, 4  ;;  %v896_v35 = vor.u32 %v894_v17, %v893_v16  ;;  %v898_v36 = vrot.slane %v893_v16, 4 }
 0x314   :  { %v905_v39 = vor.u32 %v903_v24, %v902_v20  ;;  %v906_v40 = vrot.slane %v902_v20, 4  ;;  %v913_v42 = vor.u32 %v911_v27, %v910_v25  ;;  %v915_v43 = vrot.slane %v910_v25, 4 }
 0x315   :  { %v897_v45 = vsel %vm2551_vm6, %v889_v34, %v896_v35  ;;  %v925_v46 = vsel %vm2845_vm8, %v888_v32, %v924_v19  ;;  %v929_v47 = vsel %vm2824_vm5, %v898_v36, %v928_v30 }
 0x316   :  { %v914_v48 = vsel %vm2551_vm6, %v906_v40, %v913_v42  ;;  %926 = vst [vmem:[#allocation3] sm:$0xf] %v925_v46  ;;  %927 = vst [vmem:[#allocation3 + $0x4] sm:$0xf] %v897_v45  ;;  %v932_v49 = vsel %vm2845_vm8, %v905_v39, %v931_v37  ;;  %v936_v50 = vsel %vm2824_vm5, %v915_v43, %v935_v38 }
 0x317   :  { %930 = vst [vmem:[#allocation3 + $0x8] sm:$0x1] %v929_v47  ;;  %933 = vst [vmem:[#allocation3 + $0xc] sm:$0xf] %v932_v49  ;;  %v2373_v49 = vld [vmem:[#allocation4 + $0x8] sm:$0xff]  }
 0x318   :  { %934 = vst [vmem:[#allocation3 + $0x10] sm:$0xf] %v914_v48  ;;  %937 = vst [vmem:[#allocation3 + $0x14] sm:$0x1] %v936_v50 }
 0x31d   :  { %v938_v52 = vld [vmem:[#allocation3] sm:$0xf]  ;;  %v2861_v53 = vld [vmem:[#allocation3 + $0x4] sm:$0xf] }
 0x31e   :  { %v2863_v54 = vld [vmem:[#allocation3 + $0x8] sm:$0x1]  ;;  %v961_v55 = vshrl.u32 %v938_v52, 16  ;;  %v964_v23 = vshll.u32 %v938_v52, 16  ;;  %v970_v57 = vshll.u32 %v2861_v53, 16  ;;  %v974_v58 = vshrl.u32 %v2861_v53, 16 }
 0x31f   :  { %v2867_v59 = vld [vmem:[#allocation3 + $0xc] sm:$0xf]  ;;  %v980_v61 = vshll.u32 %v2863_v54, 16  ;;  %v2870_v21 = vld [vmem:[#allocation3 + $0x10] sm:$0xf] }
 0x320   :  { %v985_v63 = vshrl.u32 %v2867_v59, 16  ;;  %v963_v0 = vrot.slane %v961_v55, 4  ;;  %v966_v3 = vrot.slane %v964_v23, 5  ;;  %v972_v4 = vrot.slane %v970_v57, 5  ;;  %v959_v26 = vld [vmem:[#allocation3 + $0x14] sm:$0x1] }
 0x321   :  { %v976_v6 = vrot.slane %v974_v58, 4  ;;  %v988_v9 = vshll.u32 %v2867_v59, 16  ;;  %v994_v31 = vshll.u32 %v2870_v21, 16  ;;  %v998_v29 = vshrl.u32 %v2870_v21, 16  ;;  %v1240_v12 = vld [vmem:[#allocation3 + $0xc] sm:$0xe] }
 0x322   :  { %v987_v7 = vrot.slane %v985_v63, 4  ;;  %v967_v10 = vor.u32 %v966_v3, %v963_v0  ;;  %v982_v13 = vrot.slane %v980_v61, 5  ;;  %v1004_v25 = vshll.u32 %v959_v26, 16  ;;  %v2375_v23 = vld [vmem:[#allocation4 + $0x18] sm:$0xff]   ;;  %v2376_v57 = vld [vmem:[#allocation4 + $0x20] sm:$0xff]   ;;  %v2377_v58 = vld [vmem:[#allocation4 + $0x28] sm:$0xff]  }
 0x323   :  { %v977_v22 = vor.u32 %v976_v6, %v972_v4  ;;  %v990_v16 = vrot.slane %v988_v9, 5  ;;  %v996_v17 = vrot.slane %v994_v31, 5  ;;  %v1000_v24 = vrot.slane %v998_v29, 4  ;;  %v2378_v61 = vld [vmem:[#allocation4 + $0x30] sm:$0xff]   ;;  %v1239_v63 = vld [vmem:[#allocation3] sm:$0xe] }
 0x324   :  { %v968_v19 = vrot.slane %v967_v10, 4  ;;  %v1831_v28 = vrot.slane %v1240_v12, 9  ;;  %v1254_v35 = vrot.slane %v2870_v21, 5  ;;  %v1006_v39 = vrot.slane %v1004_v25, 5  ;;  %v2381_v3 = vld [vmem:[#allocation4 + $0x80] sm:$0xff]   ;;  %v2382_v9 = vld [vmem:[#allocation4 + $0x88] sm:$0xff]  }
 0x325   :  { %v978_v20 = vrot.slane %v977_v22, 4  ;;  %v991_v27 = vor.u32 %v990_v16, %v987_v7  ;;  %v1001_v34 = vor.u32 %v1000_v24, %v996_v17  ;;  %v1257_v42 = vrot.slane %v959_v26, 5  ;;  %v2383_v10 = vld [vmem:[#allocation4 + $0x90] sm:$0xff]   ;;  %v2385_v22 = vld [vmem:[#allocation4 + $0xa0] sm:$0xff]  }
 0x326   :  { %v973_v30 = vsel %vm2632_vm14, %v968_v19, %v972_v4  ;;  %v1256_v40 = vrot.slane %v1254_v35, 4  ;;  %v2887_v46 = vsel %vm2640_vm15, %v1831_v28, %v1254_v35  ;;  %v1820_v55 = vcombine.low %v938_v52, %v2861_v53 }
 0x327   :  { %v983_v32 = vsel %vm2632_vm14, %v978_v20, %v982_v13  ;;  %v992_v37 = vrot.slane %v991_v27, 4  ;;  %v1002_v38 = vrot.slane %v1001_v34, 4  ;;  %v1247_v52 = vrot.slane %v2861_v53, 5 }
 0x328   :  { %v1810_v36 = vcombine.low %v973_v30, %v983_v32  ;;  %v2891_v47 = vsel %vm2640_vm15, %v1256_v40, %v1257_v42  ;;  %v1830_v4 = vrot.slane %v1239_v63, 9  ;;  %v1250_v6 = vrot.slane %v2863_v54, 5  ;;  %v2384_v54 = vld [vmem:[#allocation4 + $0x98] sm:$0xff]  }
 0x329   :  { %v997_v43 = vsel %vm2632_vm14, %v992_v37, %v996_v17  ;;  %v1007_v45 = vsel %vm2632_vm14, %v1002_v38, %v1006_v39  ;;  %v1833_v50 = vcombine.low %v2887_v46, %v2891_v47  ;;  %v1249_v0 = vrot.slane %v1247_v52, 4 }
 0x32a   :  { %2104 = vmatprep.mubr.bf16.mxu0 %v1810_v36  ;;  %v1811_v48 = vcombine.low %v997_v43, %v1007_v45  ;;  %v1821_v7 = vcombine.low %v2867_v59, %v2870_v21  ;;  %v1248_v53 = vsel %vm2640_vm15, %v1830_v4, %v1247_v52  ;;  %v2386_v59 = vld [vmem:[#allocation4 + $0xa8] sm:$0xff]   ;;  %v2388_v21 = vld [vmem:[#allocation4 + $0xb8] sm:$0xff]  }
 0x32b   :  { %v1251_v26 = vsel %vm2640_vm15, %v1249_v0, %v1250_v6 }
 0x32c   :  { %2105 = vmatmul.mubr.bf16.vlgmr.msra.gmra.mrb[8].mxu0 %v1811_v48  ;;  %v1832_v31 = vcombine.low %v1248_v53, %v1251_v26 }
 0x32d   :  { %2109 = vmatpush3.bf16.msra.mxu0 %v2833_v41  ;;  %2124 = vmatprep.mubr.bf16.mxu0 %v1820_v55  ;;  %v2379_v41 = vld [vmem:[#allocation4 + $0x38] sm:$0xff]  }
 0x32e   :  { %2110 = vmatprep.subr.bf16.mxu0 %v2373_v49 }
 0x331   :  { %2111 = vmatpush3.bf16.msra.mxu0 %v2373_v49 }
 0x332   :  { %2112 = vmatprep.subr.bf16.mxu0 %v2374_v2 }
 0x335   :  { %2113 = vmatpush3.bf16.msra.mxu0 %v2374_v2 }
 0x336   :  { %2114 = vmatprep.subr.bf16.mxu0 %v2375_v23 }
 0x339   :  { %2115 = vmatpush3.bf16.msra.mxu0 %v2375_v23 }
 0x33a   :  { %2116 = vmatprep.subr.bf16.mxu0 %v2376_v57 }
 0x33d   :  { %2117 = vmatpush3.bf16.msra.mxu0 %v2376_v57 }
 0x33e   :  { %2118 = vmatprep.subr.bf16.mxu0 %v2377_v58 }
 0x341   :  { %2119 = vmatpush3.bf16.msra.mxu0 %v2377_v58 }
 0x342   :  { %2120 = vmatprep.subr.bf16.mxu0 %v2378_v61 }
 0x345   :  { %2121 = vmatpush3.bf16.msra.mxu0 %v2378_v61 }
 0x346   :  { %2122 = vmatprep.subr.bf16.mxu0 %v2379_v41 }
 0x349   :  { %2123 = vmatpush3.bf16.msra.mxu0 %v2379_v41 }
 0x34a   :  { %2128 = vmatprep.subr.bf16.mxu0 %v2381_v3 }
 0x34c   :  { %2125 = vmatmul.mubr.bf16.vlgmr.msra.gmra.mrb[8].mxu0 %v1821_v7 }
 0x34d   :  { %2129 = vmatpush3.bf16.msra.mxu0 %v2381_v3  ;;  %2144 = vmatprep.mubr.bf16.mxu0 %v1832_v31 }
 0x34e   :  { %2130 = vmatprep.subr.bf16.mxu0 %v2382_v9 }
 0x351   :  { %2131 = vmatpush3.bf16.msra.mxu0 %v2382_v9 }
 0x352   :  { %2132 = vmatprep.subr.bf16.mxu0 %v2383_v10 }
 0x355   :  { %2133 = vmatpush3.bf16.msra.mxu0 %v2383_v10 }
 0x356   :  { %2134 = vmatprep.subr.bf16.mxu0 %v2384_v54 }
 0x359   :  { %2135 = vmatpush3.bf16.msra.mxu0 %v2384_v54 }
 0x35a   :  { %2136 = vmatprep.subr.bf16.mxu0 %v2385_v22 }
 0x35d   :  { %2137 = vmatpush3.bf16.msra.mxu0 %v2385_v22 }
 0x35e   :  { %2138 = vmatprep.subr.bf16.mxu0 %v2386_v59 }
 0x361   :  { %2139 = vmatpush3.bf16.msra.mxu0 %v2386_v59 }
 0x362   :  { %2140 = vmatprep.subr.bf16.mxu0 %v2387_v33 }
 0x365   :  { %2141 = vmatpush3.bf16.msra.mxu0 %v2387_v33 }
 0x366   :  { %2142 = vmatprep.subr.bf16.mxu0 %v2388_v21 }
 0x369   :  { %2143 = vmatpush3.bf16.msra.mxu0 %v2388_v21 }
 0x36a   :  { %2218 = vmatprep.subr.mxu0 %v2446_v15 }
 0x36c   :  { %2145 = vmatmul.mubr.bf16.vlgmr.msra.gmra.mrb[8].mxu0 %v1833_v50 }
 0x36d   :  { %2219 = vmatpush3.msra.mxu0 %v2808_v56  ;;  %2220 = vmatprep.mubr.msk.f32.mxu0 %vm2445_vm0, %v2446_v15 }
 0x43f   :  { %v2909_v29 = vpop.f32.mrb[8].mxu0 }
 0x440   :  { %v2911_v12 = vpop.f32.mrb[9].mxu0  ;;  %v1396_v24 = vmul.f32 %v2909_v29, %v2909_v29 }
 0x441   :  { %v2913_v13 = vpop.f32.mrb[10].mxu0  ;;  %v1394_v17 = vmul.f32 %v2911_v12, %v2911_v12 }
 0x442   :  { %v2915_v16 = vpop.f32.mrb[11].mxu0  ;;  %v1397_v28 = vmul.f32 %v2913_v13, %v2913_v13 }
 0x443   :  { %v1385_v19 = vadd.f32 %v2915_v16, %v2911_v12  ;;  %v1395_v20 = vmul.f32 %v2915_v16, %v2915_v16 }
 0x445   :  { %v1386_v25 = vadd.f32 %v2909_v29, %v1385_v19  ;;  %v1398_v27 = vadd.f32 %v1395_v20, %v1394_v17 }
 0x447   :  { %v1387_v30 = vadd.f32 %v2913_v13, %v1386_v25  ;;  %v1399_v32 = vadd.f32 %v1398_v27, %v1396_v24 }
 0x449   :  { %v1388_v34 = vrot.slane %v1387_v30, 4  ;;  %v1400_v35 = vadd.f32 %v1399_v32, %v1397_v28 }
 0x44b   :  { %v1389_v36 = vadd.f32 %v1388_v34, %v1387_v30  ;;  %v1401_v42 = vrot.slane %v1400_v35, 4 }
 0x44d   :  { %v1390_v37 = vrot.slane %v1389_v36, 2  ;;  %v1402_v43 = vadd.f32 %v1401_v42, %v1400_v35 }
 0x44f   :  { %v1391_v38 = vadd.f32 %v1390_v37, %v1389_v36 }
 0x451   :  { %v1392_v39 = vrot.slane %v1391_v38, 1 }
 0x453   :  { %v1393_v40 = vadd.f32 %v1392_v39, %v1391_v38 }
 0x455   :  { %2181 = vmatmul.mubr.f32.vlgmr.msra.gmra.mrb[8].mxu1 %v1393_v40 }
 0x456   :  { %2302 = vmatpush3.bf16.msra.mxu1 %v2673_v60  ;;  %2215 = vmatprep.mubr.msk.f32.mxu1 %vm2445_vm0, %v2446_v15  ;;  %v1403_v60 = vrot.slane %v1402_v43, 2 }
 0x457   :  { %2303 = vmatprep.subr.bf16.mxu1 %v2444_v51 }
 0x45a   :  { %2305 = vmatpush3.bf16.msra.mxu1 %v2679_v62  ;;  %v1404_v62 = vadd.f32 %v1403_v60, %v1402_v43 }
 0x45b   :  { %2306 = vmatprep.subr.bf16.mxu1 %v2444_v51 }
 0x45e   :  { %2308 = vmatpush3.bf16.msra.mxu1 %v2690_v1  ;;  %v1405_v1 = vrot.slane %v1404_v62, 1 }
 0x45f   :  { %2309 = vmatprep.subr.bf16.mxu1 %v2444_v51 }
 0x462   :  { %2311 = vmatpush3.bf16.msra.mxu1 %v2700_v5  ;;  %v1406_v5 = vadd.f32 %v1405_v1, %v1404_v62 }
 0x463   :  { %2312 = vmatprep.subr.bf16.mxu1 %v2444_v51 }
 0x466   :  { %2314 = vmatpush3.bf16.msra.mxu1 %v2710_v8 }
 0x467   :  { %2315 = vmatprep.subr.bf16.mxu1 %v2444_v51 }
 0x46a   :  { %2317 = vmatpush3.bf16.msra.mxu1 %v2720_v11 }
 0x46b   :  { %2318 = vmatprep.subr.bf16.mxu1 %v2444_v51 }
 0x46e   :  { %2320 = vmatpush3.bf16.msra.mxu1 %v2729_v14 }
 0x46f   :  { %2321 = vmatprep.subr.bf16.mxu1 %v2444_v51 }
 0x472   :  { %2323 = vmatpush3.bf16.msra.mxu1 %v2744_v18  ;;  %v1567_v18 = vld [vmem:[%s2981_s5] sm:$0x1]  ;;  %s2447_s5 = smov [#allocation7]  }
 0x473   :  { %2223 = vmatprep.subr.mxu1 %v2446_v15 }
 0x475   :  { %2216 = vmatmul.mubr.f32.vlgmr.msra.gmra.mrb[10].mxu1 %v1406_v5 }
 0x476   :  { %2224 = vmatpush3.msra.mxu1 %v2808_v56  ;;  %2225 = vmatprep.mubr.msk.f32.mxu1 %vm2445_vm0, %v2446_v15  ;;  %v1571_v15 = vld [vmem:[%s2982_s6] sm:$0x1]  ;;  %s1750_s6 = sshll.u32 %s2447_s5, 4  ;;  %s1751_s6 = int_to_ptr.vmem [resolvable:$true] %s1750_s6 }
 0x477   :  { %s2415_s22 = scalar_lea.vmem %s1751_s6, 512  ;;  %p2420_p9 = scmp.lt.s32.totalorder %s1751_s6, %s1751_s6 }
 0x478   :  { %p2416_p8 = scmp.ne.s32.totalorder %s1751_s6, %s2415_s22  ;;  %p2421_p10 = scmp.lt.s32.totalorder %s2415_s22, %s2415_s22 }
 0x47a   :  { %p2422_p11 = por %p2421_p10, %p2420_p9 }
 0x47c   :  { %p2423_p12 = pnand %p2422_p11, %p2416_p8 }
 0x528   :  { %v1489_v8 = vpop.f32.mrb[8].mxu1 }
 0x529   :  { %v2182_v11 = vpop.f32.mrb[9].mxu1  ;;  %v1563_v45 = vmul.f32 0.001953125, %v1489_v8 }
 0x52b   :  { %v1565_v47 = vmul.f32 %v1563_v45, %v1563_v45 }
 0x548   :  { %v1559_v46 = vpop.f32.mrb[10].mxu1 }
 0x549   :  { %v1564_v14 = vmul.f32 0.001953125, %v1559_v46  ;;  %v2217_v48 = vpop.f32.mrb[11].mxu1 }
 0x54b   :  { %v1566_v51 = vsub.f32 %v1564_v14, %v1565_v47 }
 0x54d   :  { %v1568_v49 = vadd.f32 1e-05, %v1566_v51 }
 0x54f   :  { %2391 = vrsqrt.f32 %v1568_v49 }
 0x559   :  { %v2392_v50 = vpop.eup %2391 }
 0x55a   :  { %v1570_v55 = vmul.f32 %v2392_v50, %v1567_v18 }
 0x55c   :  { %2221 = vmatmul.mubr.msk.f32.vlgmr.msra.gmra.mrb[12].mxu0 %vm688_vm2, %v1570_v55  ;;  %v1572_v56 = vmul.f32 %v1570_v55, %v1563_v45 }
 0x55e   :  { %v1573_v2 = vsub.f32 %v1571_v15, %v1572_v56 }
 0x560   :  { %2226 = vmatmul.mubr.msk.f32.vlgmr.msra.gmra.mrb[12].mxu1 %vm688_vm2, %v1573_v2 }
 0x62f   :  { %v1644_v23 = vpop.f32.mrb[12].mxu0 }
 0x630   :  { %v1724_v57 = vrot.slane %v1644_v23, %v2836_v44  ;;  %v2222_v58 = vpop.f32.mrb[13].mxu0 }
 0x632   :  { %v1725_v61 = vmul.f32 %v1724_v57, %v2911_v12  ;;  %v1726_v52 = vmul.f32 %v1724_v57, %v2915_v16  ;;  %v1727_v41 = vmul.f32 %v2909_v29, %v1724_v57  ;;  %v1728_v63 = vmul.f32 %v2913_v13, %v1724_v57 }
 0x633   :  { %v1717_v0 = vpop.f32.mrb[12].mxu1 }
 0x634   :  { %v1732_v3 = vrot.slane %v1717_v0, %v2836_v44  ;;  %v2227_v4 = vpop.f32.mrb[13].mxu1 }
 0x636   :  { %v1733_v6 = vadd.f32 %v1732_v3, %v1725_v61  ;;  %v1734_v26 = vadd.f32 %v1732_v3, %v1726_v52  ;;  %v1735_v7 = vadd.f32 %v1732_v3, %v1727_v41  ;;  %v1736_v53 = vadd.f32 %v1732_v3, %v1728_v63 }
 0x638   :  { %v1737_v9 = vmax.f32 %v1733_v6, 0.0  ;;  %v1738_v31 = vmax.f32 %v1734_v26, 0.0  ;;  %v1739_v10 = vmax.f32 %v1735_v7, 0.0  ;;  %v1740_v54 = vmax.f32 %v1736_v53, 0.0 }
 0x63a   :  { %1741 = vst [vmem:[#allocation7] sm:$0xff] %v1737_v9  ;;  %1742 = vst [vmem:[#allocation7 + $0x8] sm:$0xff] %v1738_v31 }
 0x63b   :  { %1743 = vst [vmem:[#allocation7 + $0x10] sm:$0xff] %v1739_v10  ;;  %1744 = vst [vmem:[#allocation7 + $0x18] sm:$0xff] %v1740_v54 }
 0x63c   :  { %2426 = shalt.err (!%p2423_p12)
}
 0x63d   :  { %s2427_s25 = scalar_lea.hbm %s2985_s9, 512 }
 0x63e   :  { %p2428_p13 = scmp.ne.s32.totalorder %s2985_s9, %s2427_s25  ;;  %p2431_p0 = scmp.lt.u32.totalorder %s2427_s25, %s2985_s9 }
 0x640   :  { %p2433_p1 = pnand %p2431_p0, %p2428_p13 }
 0x642   :  { %2436 = shalt.err (!%p2433_p1)
}
 0x643   :  { %s2448_s29 = smov 128   ;;  %s2449_s30 = smov 8  }
 0x644   :  { %1756 = dma.vmem_to_hbm [thread:$0]  %s1751_s6, 512, %s2985_s9, [#allocation6], %s2448_s29, %s2448_s29, %s2449_s30  }
 0x645   :  { %2439 = dma.done.wait [#allocation6], 512  }
 0x646   :  { %2440 = vsyncadd [#allocation6], 4294966784 }
 0x647   :  { %1760 = vsyncpa [#allocation5], 1 }
 0x648   :  { %1761 = vsyncpa [#allocation6], 1 }

</bundles_post_ra>
